<compile_context>
chip_gen: v7x
topology: tpu7x:2x2x1
jax: 0.10.0
libtpu: 0.0.40
codegen_flags: <defaults>
</compile_context>

<pallas_src>
import jax
import jax.numpy as jnp
from jax.experimental import pallas as pl
from jax.experimental.pallas import tpu as pltpu


def _round_up(n: int, m: int) -> int:
    return ((n + m - 1) // m) * m


def mlp_kernel(x_ref, w1_ref, b1_ref, w2_ref, b2_ref, o_ref):
    # Layer 1 on the MXU with f32 accumulation; bias + ReLU on the f32 VPU path.
    h = jnp.dot(x_ref[...], w1_ref[...], preferred_element_type=jnp.float32)
    h = jnp.maximum(h + b1_ref[...], 0.0)
    # Layer 2: narrow-N matmul straight into the (batch_tile, n_actions) tile.
    o = jnp.dot(h.astype(w2_ref.dtype), w2_ref[...],
                preferred_element_type=jnp.float32)
    o_ref[...] = (o + b2_ref[...]).astype(o_ref.dtype)


def prepare_params(w1, b1, w2, b2, *, param_dtype=jnp.float32):
    """One-time (per parameter update) layout prep, hoisted out of the hot path.

    w1: (hidden, obs), b1: (hidden,), w2: (n_actions, hidden), b2: (n_actions,)
    Returns (w1t, b1p, w2t, b2p) with weights transposed to (K, N); obs padded
    only to the sublane width, hidden padded to a 128-lane multiple, n_actions
    left unpadded.  Biases stay f32 (added to the f32 accumulator)."""
    hidden, obs = w1.shape
    n_actions, hidden2 = w2.shape
    assert hidden2 == hidden
    sub = 16 if jnp.dtype(param_dtype).itemsize == 2 else 8
    obs_p = _round_up(obs, sub)
    hid_p = _round_up(hidden, 128)

    w1t = jnp.pad(w1.T, ((0, obs_p - obs), (0, hid_p - hidden))).astype(param_dtype)
    w2t = jnp.pad(w2.T, ((0, hid_p - hidden), (0, 0))).astype(param_dtype)
    b1p = jnp.pad(b1, ((0, hid_p - hidden),)).astype(jnp.float32).reshape(1, hid_p)
    b2p = b2.astype(jnp.float32).reshape(1, n_actions)
    return w1t, b1p, w2t, b2p


def net_forward(x, w1t, b1p, w2t, b2p, *, batch_tile=None):
    """x: (B, obs) -> (B, n_actions) f32.  Params from prepare_params()."""
    B, obs = x.shape
    obs_p, hid_p = w1t.shape
    _, n_actions = w2t.shape

    # Large tiles amortize the ~0.35us per-grid-step overhead; above 512 rows
    # the grid has >=2 "parallel" steps so both v7x TensorCores are fed.
    if batch_tile is None:
        batch_tile = _round_up(B, 8) if B <= 512 else 512
    b_p = _round_up(B, batch_tile)

    xd = x.astype(w1t.dtype)
    if (b_p, obs_p) != (B, obs):
        # Exact: padded K columns multiply zero weight rows; padded batch rows
        # are sliced off below (do NOT reduce over them downstream unmasked).
        xd = jnp.pad(xd, ((0, b_p - B), (0, obs_p - obs)))

    grid = (b_p // batch_tile,)
    itemsize = jnp.dtype(w1t.dtype).itemsize
    cost = pl.CostEstimate(
        flops=2 * b_p * (obs_p * hid_p + hid_p * n_actions),
        transcendentals=0,
        bytes_accessed=(b_p * obs_p * itemsize
                        + (obs_p * hid_p + hid_p * n_actions) * itemsize
                        + (hid_p + n_actions) * 4
                        + b_p * n_actions * 4),
    )

    out = pl.pallas_call(
        mlp_kernel,
        out_shape=jax.ShapeDtypeStruct((b_p, n_actions), jnp.float32),
        grid=grid,
        in_specs=[
            pl.BlockSpec((batch_tile, obs_p), lambda i: (i, 0)),   # x tile
            pl.BlockSpec((obs_p, hid_p), lambda i: (0, 0)),        # W1^T (resident)
            pl.BlockSpec((1, hid_p), lambda i: (0, 0)),            # b1
            pl.BlockSpec((hid_p, n_actions), lambda i: (0, 0)),    # W2^T (resident)
            pl.BlockSpec((1, n_actions), lambda i: (0, 0)),        # b2
        ],
        out_specs=pl.BlockSpec((batch_tile, n_actions), lambda i: (i, 0)),
        compiler_params=pltpu.CompilerParams(
            dimension_semantics=("parallel",),   # shard batch tiles across TCs (v7x)
        ),
        cost_estimate=cost,
    )(xd, w1t, b1p, w2t, b2p)

    return out[:B] if b_p != B else out


def reference_forward(x, w1, b1, w2, b2):
    h = jnp.maximum(x @ w1.T + b1, 0.0)
    return h @ w2.T + b2


if __name__ == "__main__":
    # CartPole sizes from the original script: obs_size=4, HIDDEN_SIZE=128,
    # n_actions=2.  Batch = 200 exercises a rollout-sized, non-8-aligned... it
    # is 8-aligned, single-tile, unpadded-batch fast path.
    obs_size, hidden_size, n_actions, batch = 4, 128, 2, 200

    key = jax.random.PRNGKey(0)
    kx, kw1, kb1, kw2, kb2 = jax.random.split(key, 5)

    x = jax.random.normal(kx, (batch, obs_size), dtype=jnp.float32)
    lim1 = 1.0 / (obs_size ** 0.5)
    lim2 = 1.0 / (hidden_size ** 0.5)
    w1 = jax.random.uniform(kw1, (hidden_size, obs_size), jnp.float32, -lim1, lim1)
    b1 = jax.random.uniform(kb1, (hidden_size,), jnp.float32, -lim1, lim1)
    w2 = jax.random.uniform(kw2, (n_actions, hidden_size), jnp.float32, -lim2, lim2)
    b2 = jax.random.uniform(kb2, (n_actions,), jnp.float32, -lim2, lim2)

    # Layout prep runs once per parameter update, not per forward call.
    params = prepare_params(w1, b1, w2, b2)

    fwd = jax.jit(net_forward)
    out = jax.block_until_ready(fwd(x, *params))

    ref = reference_forward(x, w1, b1, w2, b2)
    assert out.shape == (batch, n_actions)
    max_err = float(jnp.max(jnp.abs(out - ref)))
    assert jnp.allclose(out, ref, atol=1e-4, rtol=1e-4), f"max abs err {max_err}"

    print("KERNEL_OK")
</pallas_src>

<mosaic_0001>
module attributes {stable_mosaic.version = 11 : i64} {
  func.func @mlp_kernel(%arg0: i32, %arg1: memref<200x8xf32, #tpu.memory_space<vmem>>, %arg2: memref<8x128xf32, #tpu.memory_space<vmem>>, %arg3: memref<1x128xf32, #tpu.memory_space<vmem>>, %arg4: memref<128x2xf32, #tpu.memory_space<vmem>>, %arg5: memref<1x2xf32, #tpu.memory_space<vmem>>, %arg6: memref<200x2xf32, #tpu.memory_space<vmem>>) attributes {dimension_semantics = [#tpu.dimension_semantics<parallel>], iteration_bounds = array<i64: 1>, scalar_prefetch = 0 : i64, scratch_operands = 0 : i64, tpu.core_type = #tpu.core_type<tc>, window_params = [{transform_indices = @transform_0, window_bounds = array<i64: 200, 8>}, {pipeline_mode = #tpu.pipeline_mode<synchronous>, transform_indices = @transform_1, window_bounds = array<i64: 8, 128>}, {pipeline_mode = #tpu.pipeline_mode<synchronous>, transform_indices = @transform_2, window_bounds = array<i64: 1, 128>}, {pipeline_mode = #tpu.pipeline_mode<synchronous>, transform_indices = @transform_3, window_bounds = array<i64: 128, 2>}, {pipeline_mode = #tpu.pipeline_mode<synchronous>, transform_indices = @transform_4, window_bounds = array<i64: 1, 2>}, {transform_indices = @transform_5, window_bounds = array<i64: 200, 2>}]} {
    %c0 = arith.constant 0 : index
    %c0_0 = arith.constant 0 : index
    %0 = vector.load %arg1[%c0, %c0_0] : memref<200x8xf32, #tpu.memory_space<vmem>>, vector<200x8xf32>
    %c0_1 = arith.constant 0 : index
    %c0_2 = arith.constant 0 : index
    %1 = vector.load %arg2[%c0_1, %c0_2] : memref<8x128xf32, #tpu.memory_space<vmem>>, vector<8x128xf32>
    %cst = arith.constant dense<0.000000e+00> : vector<200x128xf32>
    %2 = tpu.matmul %0, %1, %cst {dimension_numbers = #tpu.dot_dimension_numbers<[1], [0], [0], [1], [0, 0, 1, 1], [], []>} : vector<200x8xf32>, vector<8x128xf32>, vector<200x128xf32> -> vector<200x128xf32>
    %c0_3 = arith.constant 0 : index
    %c0_4 = arith.constant 0 : index
    %3 = vector.load %arg3[%c0_3, %c0_4] : memref<1x128xf32, #tpu.memory_space<vmem>>, vector<1x128xf32>
    %4 = vector.broadcast %3 : vector<1x128xf32> to vector<200x128xf32>
    %5 = arith.addf %2, %4 : vector<200x128xf32>
    %cst_5 = arith.constant 0.000000e+00 : f32
    %6 = vector.broadcast %cst_5 : f32 to vector<200x128xf32>
    %7 = arith.maximumf %5, %6 : vector<200x128xf32>
    %c0_6 = arith.constant 0 : index
    %c0_7 = arith.constant 0 : index
    %8 = vector.load %arg4[%c0_6, %c0_7] : memref<128x2xf32, #tpu.memory_space<vmem>>, vector<128x2xf32>
    %cst_8 = arith.constant dense<0.000000e+00> : vector<200x2xf32>
    %9 = tpu.matmul %7, %8, %cst_8 {dimension_numbers = #tpu.dot_dimension_numbers<[1], [0], [0], [1], [0, 0, 1, 1], [], []>} : vector<200x128xf32>, vector<128x2xf32>, vector<200x2xf32> -> vector<200x2xf32>
    %c0_9 = arith.constant 0 : index
    %c0_10 = arith.constant 0 : index
    %10 = vector.load %arg5[%c0_9, %c0_10] : memref<1x2xf32, #tpu.memory_space<vmem>>, vector<1x2xf32>
    %11 = vector.broadcast %10 : vector<1x2xf32> to vector<200x2xf32>
    %12 = arith.addf %9, %11 : vector<200x2xf32>
    %c0_11 = arith.constant 0 : index
    %c0_12 = arith.constant 0 : index
    %13 = vector.load %arg6[%c0_11, %c0_12] : memref<200x2xf32, #tpu.memory_space<vmem>>, vector<200x2xf32>
    tpu.vector_store %arg6[%c0_11, %c0_12], %12 {strides = array<i32>} : memref<200x2xf32, #tpu.memory_space<vmem>>, vector<200x2xf32>,
    return
  }
  func.func @transform_0(%arg0: i32) -> (i32, i32) {
    %c0_i32 = arith.constant 0 : i32
    %c0_i32_0 = arith.constant 0 : i32
    return %arg0, %c0_i32 : i32, i32
  }
  func.func @transform_1(%arg0: i32) -> (i32, i32) {
    %c0_i32 = arith.constant 0 : i32
    %c0_i32_0 = arith.constant 0 : i32
    %c0_i32_1 = arith.constant 0 : i32
    return %c0_i32, %c0_i32_0 : i32, i32
  }
  func.func @transform_2(%arg0: i32) -> (i32, i32) {
    %c0_i32 = arith.constant 0 : i32
    %c0_i32_0 = arith.constant 0 : i32
    %c0_i32_1 = arith.constant 0 : i32
    return %c0_i32, %c0_i32_0 : i32, i32
  }
  func.func @transform_3(%arg0: i32) -> (i32, i32) {
    %c0_i32 = arith.constant 0 : i32
    %c0_i32_0 = arith.constant 0 : i32
    %c0_i32_1 = arith.constant 0 : i32
    return %c0_i32, %c0_i32_0 : i32, i32
  }
  func.func @transform_4(%arg0: i32) -> (i32, i32) {
    %c0_i32 = arith.constant 0 : i32
    %c0_i32_0 = arith.constant 0 : i32
    %c0_i32_1 = arith.constant 0 : i32
    return %c0_i32, %c0_i32_0 : i32, i32
  }
  func.func @transform_5(%arg0: i32) -> (i32, i32) {
    %c0_i32 = arith.constant 0 : i32
    %c0_i32_0 = arith.constant 0 : i32
    return %arg0, %c0_i32 : i32, i32
  }
}

</mosaic_0001>

<bundles_post_ra>
// kernel: net_forward.1
= control target key start
LH: loop header
LB: loop body
LE: loop exit
PB: predicated region body
PF: predicated region fallthrough
CT: control target
= control target key end

     0   :  { %vm53_vm0 = vcmask 64512   ;;  %v908_v0 = vmov 0.0   ;;  %vm909_vm1 = vmmov 0   ;;  %v910_v3 = vmov 0.0|0.0   ;;  %s1369_s1 = inlined_call_operand.vmem [shape: f32[8,128], index: 1, kind: input, shape index: {}]   ;;  %s1370_s0 = inlined_call_operand.vmem [shape: f32[200,8], index: 0, kind: input, shape index: {}]   ;;  %s1371_s3 = inlined_call_operand.vmem [shape: f32[128,2], index: 3, kind: input, shape index: {}]   ;;  %s1372_s2 = inlined_call_operand.vmem [shape: f32[1,128], index: 2, kind: input, shape index: {}]   ;;  %s1373_s4 = inlined_call_operand.vmem [shape: f32[1,2], index: 4, kind: input, shape index: {}]   ;;  %s1374_s5 = inlined_call_operand.vmem [shape: f32[200,2], index: 5, kind: output, shape index: {}]  }
   0x1   :  { %681 = vmatprep.subr.mxu0 %v908_v0  ;;  %v45_v1 = vld [vmem:[%s1369_s1] sm:$0xff]  ;;  %683 = vmatprep.mubr.msk.f32.mxu0 %vm909_vm1, %v908_v0  ;;  %v21_v4 = vld [vmem:[%s1370_s0 + $0x8] sm:$0xff]  ;;  %v22_v5 = vld [vmem:[%s1370_s0 + $0x10] sm:$0xff]  ;;  %vm557_vm2 = vcmask 15360  }
   0x2   :  { %v20_v2 = vld [vmem:[%s1370_s0] sm:$0xff]  ;;  %682 = vmatpush3.msra.mxu0 %v45_v1  ;;  %889 = vmatprep.subr.bf16.mxu1 %v910_v3  ;;  %v345_v7 = vld [vmem:[%s1371_s3 + $0x8] sm:$0xff]  ;;  %v346_v8 = vld [vmem:[%s1371_s3 + $0x10] sm:$0xff] }
   0x3   :  { %684 = vmatmul.mubr.msk.f32.vlgmr.msra.gmra.mrb[0].mxu0 %vm53_vm0, %v20_v2  ;;  %865 = vmatprep.subr.bf16.mxu0 %v910_v3  ;;  %v344_v6 = vld [vmem:[%s1371_s3] sm:$0xff]  ;;  %v347_v9 = vld [vmem:[%s1371_s3 + $0x18] sm:$0xff]  ;;  %v349_v14 = vld [vmem:[%s1371_s3 + $0x28] sm:$0xff] }
   0x4   :  { %686 = vmatprep.mubr.msk.f32.mxu0 %vm909_vm1, %v908_v0  ;;  %799 = vmatprep.mubr.msk.f32.mxu1 %vm909_vm1, %v908_v0  ;;  %v866_v10 = vpack.c.bf16 %v345_v7, %v344_v6  ;;  %v23_v11 = vld [vmem:[%s1370_s0 + $0x18] sm:$0xff]  ;;  %v869_v12 = vpack.c.bf16 %v347_v9, %v346_v8  ;;  %v348_v13 = vld [vmem:[%s1371_s3 + $0x20] sm:$0xff]  ;;  %v350_v17 = vld [vmem:[%s1371_s3 + $0x30] sm:$0xff] }
   0x5   :  { %v24_v15 = vld [vmem:[%s1370_s0 + $0x20] sm:$0xff]  ;;  %v872_v16 = vpack.c.bf16 %v349_v14, %v348_v13  ;;  %v351_v18 = vld [vmem:[%s1371_s3 + $0x38] sm:$0xff]  ;;  %v25_v19 = vld [vmem:[%s1370_s0 + $0x28] sm:$0xff] }
   0x6   :  { %867 = vmatpush3.bf16.msra.mxu0 %v866_v10  ;;  %897 = vmatpush3.bf16.msra.mxu1 %v866_v10  ;;  %v875_v20 = vpack.c.bf16 %v351_v18, %v350_v17  ;;  %v352_v21 = vld [vmem:[%s1371_s3 + $0x40] sm:$0xff]  ;;  %v353_v22 = vld [vmem:[%s1371_s3 + $0x48] sm:$0xff]  ;;  %v26_v23 = vld [vmem:[%s1370_s0 + $0x30] sm:$0xff] }
   0x7   :  { %687 = vmatmul.mubr.msk.f32.gmra.mrb[2].mxu0 %vm53_vm0, %v21_v4  ;;  %868 = vmatprep.subr.bf16.mxu0 %v910_v3  ;;  %v878_v24 = vpack.c.bf16 %v353_v22, %v352_v21  ;;  %v354_v25 = vld [vmem:[%s1371_s3 + $0x50] sm:$0xff]  ;;  %v355_v26 = vld [vmem:[%s1371_s3 + $0x58] sm:$0xff]  ;;  %v356_v29 = vld [vmem:[%s1371_s3 + $0x60] sm:$0xff] }
   0x8   :  { %689 = vmatprep.mubr.msk.f32.mxu0 %vm909_vm1, %v908_v0  ;;  %890 = vmatprep.subr.bf16.mxu1 %v910_v3  ;;  %v27_v27 = vld [vmem:[%s1370_s0 + $0x38] sm:$0xff]  ;;  %v881_v28 = vpack.c.bf16 %v355_v26, %v354_v25  ;;  %v357_v30 = vld [vmem:[%s1371_s3 + $0x68] sm:$0xff]  ;;  %v28_v31 = vld [vmem:[%s1370_s0 + $0x40] sm:$0xff] }
   0x9   :  { %v884_v32 = vpack.c.bf16 %v357_v30, %v356_v29  ;;  %v29_v33 = vld [vmem:[%s1370_s0 + $0x48] sm:$0xff]  ;;  %v30_v34 = vld [vmem:[%s1370_s0 + $0x50] sm:$0xff]  ;;  %v31_v35 = vld [vmem:[%s1370_s0 + $0x58] sm:$0xff] }
   0xa   :  { %870 = vmatpush3.bf16.msra.mxu0 %v869_v12  ;;  %898 = vmatpush3.bf16.msra.mxu1 %v869_v12  ;;  %v32_v36 = vld [vmem:[%s1370_s0 + $0x60] sm:$0xff]  ;;  %v33_v37 = vld [vmem:[%s1370_s0 + $0x68] sm:$0xff]  ;;  %v34_v38 = vld [vmem:[%s1370_s0 + $0x70] sm:$0xff] }
   0xb   :  { %690 = vmatmul.mubr.msk.f32.gmra.mrb[4].mxu0 %vm53_vm0, %v22_v5  ;;  %871 = vmatprep.subr.bf16.mxu0 %v910_v3  ;;  %v35_v39 = vld [vmem:[%s1370_s0 + $0x78] sm:$0xff]  ;;  %v36_v40 = vld [vmem:[%s1370_s0 + $0x80] sm:$0xff]  ;;  %v37_v41 = vld [vmem:[%s1370_s0 + $0x88] sm:$0xff] }
   0xc   :  { %692 = vmatprep.mubr.msk.f32.mxu0 %vm909_vm1, %v908_v0  ;;  %891 = vmatprep.subr.bf16.mxu1 %v910_v3  ;;  %v38_v42 = vld [vmem:[%s1370_s0 + $0x90] sm:$0xff]  ;;  %v39_v43 = vld [vmem:[%s1370_s0 + $0x98] sm:$0xff]  ;;  %v40_v44 = vld [vmem:[%s1370_s0 + $0xa0] sm:$0xff] }
   0xd   :  { %v41_v45 = vld [vmem:[%s1370_s0 + $0xa8] sm:$0xff]  ;;  %v358_v46 = vld [vmem:[%s1371_s3 + $0x70] sm:$0xff]  ;;  %v359_v47 = vld [vmem:[%s1371_s3 + $0x78] sm:$0xff] }
   0xe   :  { %873 = vmatpush3.bf16.msra.mxu0 %v872_v16  ;;  %899 = vmatpush3.bf16.msra.mxu1 %v872_v16  ;;  %v887_v48 = vpack.c.bf16 %v359_v47, %v358_v46  ;;  %v42_v49 = vld [vmem:[%s1370_s0 + $0xb0] sm:$0xff]  ;;  %v43_v50 = vld [vmem:[%s1370_s0 + $0xb8] sm:$0xff]  ;;  %v44_v51 = vld [vmem:[%s1370_s0 + $0xc0] sm:$0xff] }
   0xf   :  { %693 = vmatmul.mubr.msk.f32.gmra.mrb[6].mxu0 %vm53_vm0, %v23_v11  ;;  %874 = vmatprep.subr.bf16.mxu0 %v910_v3  ;;  %v1166_v52 = vld [vmem:[%s1372_s2] ss:$0 sm:$0xff] }
  0x10   :  { %695 = vmatprep.mubr.msk.f32.mxu0 %vm909_vm1, %v908_v0  ;;  %892 = vmatprep.subr.bf16.mxu1 %v910_v3 }
  0x12   :  { %876 = vmatpush3.bf16.msra.mxu0 %v875_v20  ;;  %900 = vmatpush3.bf16.msra.mxu1 %v875_v20 }
  0x13   :  { %696 = vmatmul.mubr.msk.f32.gmra.mrb[8].mxu0 %vm53_vm0, %v24_v15  ;;  %877 = vmatprep.subr.bf16.mxu0 %v910_v3 }
  0x14   :  { %698 = vmatprep.mubr.msk.f32.mxu0 %vm909_vm1, %v908_v0  ;;  %893 = vmatprep.subr.bf16.mxu1 %v910_v3 }
  0x16   :  { %879 = vmatpush3.bf16.msra.mxu0 %v878_v24  ;;  %901 = vmatpush3.bf16.msra.mxu1 %v878_v24 }
  0x17   :  { %699 = vmatmul.mubr.msk.f32.gmra.mrb[10].mxu0 %vm53_vm0, %v25_v19  ;;  %880 = vmatprep.subr.bf16.mxu0 %v910_v3 }
  0x18   :  { %701 = vmatprep.mubr.msk.f32.mxu0 %vm909_vm1, %v908_v0  ;;  %894 = vmatprep.subr.bf16.mxu1 %v910_v3 }
  0x1a   :  { %882 = vmatpush3.bf16.msra.mxu0 %v881_v28  ;;  %902 = vmatpush3.bf16.msra.mxu1 %v881_v28 }
  0x1b   :  { %702 = vmatmul.mubr.msk.f32.gmra.mrb[12].mxu0 %vm53_vm0, %v26_v23  ;;  %883 = vmatprep.subr.bf16.mxu0 %v910_v3 }
  0x1c   :  { %704 = vmatprep.mubr.msk.f32.mxu0 %vm909_vm1, %v908_v0  ;;  %895 = vmatprep.subr.bf16.mxu1 %v910_v3 }
  0x1e   :  { %885 = vmatpush3.bf16.msra.mxu0 %v884_v32  ;;  %903 = vmatpush3.bf16.msra.mxu1 %v884_v32 }
  0x1f   :  { %705 = vmatmul.mubr.msk.f32.gmra.mrb[14].mxu0 %vm53_vm0, %v27_v27  ;;  %886 = vmatprep.subr.bf16.mxu0 %v910_v3 }
  0x20   :  { %707 = vmatprep.mubr.msk.f32.mxu0 %vm909_vm1, %v908_v0  ;;  %896 = vmatprep.subr.bf16.mxu1 %v910_v3 }
  0x22   :  { %888 = vmatpush3.bf16.msra.mxu0 %v887_v48  ;;  %904 = vmatpush3.bf16.msra.mxu1 %v887_v48 }
  0x23   :  { %708 = vmatmul.mubr.msk.f32.gmra.mrb[16].mxu0 %vm53_vm0, %v28_v31 }
  0x24   :  { %710 = vmatprep.mubr.msk.f32.mxu0 %vm909_vm1, %v908_v0 }
  0x27   :  { %711 = vmatmul.mubr.msk.f32.gmra.mrb[18].mxu0 %vm53_vm0, %v29_v33 }
  0x28   :  { %713 = vmatprep.mubr.msk.f32.mxu0 %vm909_vm1, %v908_v0 }
  0x2b   :  { %714 = vmatmul.mubr.msk.f32.gmra.mrb[20].mxu0 %vm53_vm0, %v30_v34 }
  0x2c   :  { %716 = vmatprep.mubr.msk.f32.mxu0 %vm909_vm1, %v908_v0 }
  0x2f   :  { %717 = vmatmul.mubr.msk.f32.gmra.mrb[22].mxu0 %vm53_vm0, %v31_v35 }
  0x30   :  { %719 = vmatprep.mubr.msk.f32.mxu0 %vm909_vm1, %v908_v0 }
  0x33   :  { %720 = vmatmul.mubr.msk.f32.gmra.mrb[24].mxu0 %vm53_vm0, %v32_v36 }
  0x34   :  { %722 = vmatprep.mubr.msk.f32.mxu0 %vm909_vm1, %v908_v0 }
  0x37   :  { %723 = vmatmul.mubr.msk.f32.gmra.mrb[26].mxu0 %vm53_vm0, %v33_v37 }
  0x38   :  { %725 = vmatprep.mubr.msk.f32.mxu0 %vm909_vm1, %v908_v0 }
  0x3b   :  { %726 = vmatmul.mubr.msk.f32.gmra.mrb[28].mxu0 %vm53_vm0, %v34_v38 }
  0x3c   :  { %728 = vmatprep.mubr.msk.f32.mxu0 %vm909_vm1, %v908_v0 }
  0x3f   :  { %729 = vmatmul.mubr.msk.f32.gmra.mrb[30].mxu0 %vm53_vm0, %v35_v39 }
  0x40   :  { %731 = vmatprep.mubr.msk.f32.mxu0 %vm909_vm1, %v908_v0 }
  0x43   :  { %732 = vmatmul.mubr.msk.f32.gmra.mrb[32].mxu0 %vm53_vm0, %v36_v40 }
  0x44   :  { %734 = vmatprep.mubr.msk.f32.mxu0 %vm909_vm1, %v908_v0 }
  0x47   :  { %735 = vmatmul.mubr.msk.f32.gmra.mrb[34].mxu0 %vm53_vm0, %v37_v41 }
  0x48   :  { %737 = vmatprep.mubr.msk.f32.mxu0 %vm909_vm1, %v908_v0 }
  0x4b   :  { %738 = vmatmul.mubr.msk.f32.gmra.mrb[36].mxu0 %vm53_vm0, %v38_v42 }
  0x4c   :  { %740 = vmatprep.mubr.msk.f32.mxu0 %vm909_vm1, %v908_v0 }
  0x4f   :  { %741 = vmatmul.mubr.msk.f32.gmra.mrb[38].mxu0 %vm53_vm0, %v39_v43 }
  0x50   :  { %743 = vmatprep.mubr.msk.f32.mxu0 %vm909_vm1, %v908_v0 }
  0x53   :  { %744 = vmatmul.mubr.msk.f32.gmra.mrb[40].mxu0 %vm53_vm0, %v40_v44 }
  0x54   :  { %746 = vmatprep.mubr.msk.f32.mxu0 %vm909_vm1, %v908_v0 }
  0x57   :  { %747 = vmatmul.mubr.msk.f32.gmra.mrb[42].mxu0 %vm53_vm0, %v41_v45 }
  0x58   :  { %749 = vmatprep.mubr.msk.f32.mxu0 %vm909_vm1, %v908_v0 }
  0x5b   :  { %750 = vmatmul.mubr.msk.f32.gmra.mrb[44].mxu0 %vm53_vm0, %v42_v49 }
  0x5c   :  { %752 = vmatprep.mubr.msk.f32.mxu0 %vm909_vm1, %v908_v0 }
  0x5f   :  { %753 = vmatmul.mubr.msk.f32.gmra.mrb[46].mxu0 %vm53_vm0, %v43_v50 }
  0x60   :  { %755 = vmatprep.mubr.msk.f32.mxu0 %vm909_vm1, %v908_v0 }
  0x63   :  { %756 = vmatmul.mubr.msk.f32.gmra.mrb[48].mxu0 %vm53_vm0, %v44_v51 }
  0x64   :  { %790 = vmatprep.mubr.msk.f32.mxu0 %vm909_vm1, %v908_v0 }
  0xd6   :  { %v195_v53 = vpop.f32.mrb[0].mxu0 }
  0xd7   :  { %v196_v54 = vadd.f32 %v1166_v52, %v195_v53  ;;  %v685_v55 = vpop.f32.mrb[1].mxu0 }
  0xd9   :  { %v319_v56 = vmax.f32 %v196_v54, 0.0 }
  0xda   :  { %v200_v57 = vpop.f32.mrb[2].mxu0 }
  0xdb   :  { %v201_v58 = vadd.f32 %v1166_v52, %v200_v57  ;;  %v688_v59 = vpop.f32.mrb[3].mxu0  ;;  %791 = vmatmul.mubr.f32.vlgmr.msra.gmra.mrb[50].mxu0 %v319_v56 }
  0xdc   :  { %793 = vmatprep.mubr.msk.f32.mxu0 %vm909_vm1, %v908_v0 }
  0xdd   :  { %v320_v60 = vmax.f32 %v201_v58, 0.0 }
  0xde   :  { %v205_v61 = vpop.f32.mrb[4].mxu0 }
  0xdf   :  { %v206_v62 = vadd.f32 %v1166_v52, %v205_v61  ;;  %v691_v63 = vpop.f32.mrb[5].mxu0  ;;  %794 = vmatmul.mubr.f32.gmra.mrb[52].mxu0 %v320_v60 }
  0xe0   :  { %796 = vmatprep.mubr.msk.f32.mxu0 %vm909_vm1, %v908_v0 }
  0xe1   :  { %v321_v1 = vmax.f32 %v206_v62, 0.0 }
  0xe2   :  { %v210_v2 = vpop.f32.mrb[6].mxu0 }
  0xe3   :  { %v211_v3 = vadd.f32 %v1166_v52, %v210_v2  ;;  %v694_v4 = vpop.f32.mrb[7].mxu0  ;;  %797 = vmatmul.mubr.f32.gmra.mrb[54].mxu0 %v321_v1 }
  0xe5   :  { %v322_v5 = vmax.f32 %v211_v3, 0.0 }
  0xe6   :  { %v215_v6 = vpop.f32.mrb[8].mxu0 }
  0xe7   :  { %v216_v7 = vadd.f32 %v1166_v52, %v215_v6  ;;  %v697_v8 = vpop.f32.mrb[9].mxu0  ;;  %800 = vmatmul.mubr.f32.vlgmr.msra.gmra.mrb[0].mxu1 %v322_v5 }
  0xe8   :  { %802 = vmatprep.mubr.msk.f32.mxu1 %vm909_vm1, %v908_v0 }
  0xe9   :  { %v323_v9 = vmax.f32 %v216_v7, 0.0 }
  0xea   :  { %v220_v10 = vpop.f32.mrb[10].mxu0 }
  0xeb   :  { %v221_v11 = vadd.f32 %v1166_v52, %v220_v10  ;;  %v700_v12 = vpop.f32.mrb[11].mxu0  ;;  %803 = vmatmul.mubr.f32.gmra.mrb[2].mxu1 %v323_v9 }
  0xec   :  { %805 = vmatprep.mubr.msk.f32.mxu1 %vm909_vm1, %v908_v0 }
  0xed   :  { %v324_v13 = vmax.f32 %v221_v11, 0.0 }
  0xee   :  { %v225_v14 = vpop.f32.mrb[12].mxu0 }
  0xef   :  { %v226_v15 = vadd.f32 %v1166_v52, %v225_v14  ;;  %v703_v16 = vpop.f32.mrb[13].mxu0  ;;  %806 = vmatmul.mubr.f32.gmra.mrb[4].mxu1 %v324_v13 }
  0xf0   :  { %808 = vmatprep.mubr.msk.f32.mxu1 %vm909_vm1, %v908_v0 }
  0xf1   :  { %v325_v17 = vmax.f32 %v226_v15, 0.0 }
  0xf2   :  { %v230_v18 = vpop.f32.mrb[14].mxu0 }
  0xf3   :  { %v231_v19 = vadd.f32 %v1166_v52, %v230_v18  ;;  %v706_v20 = vpop.f32.mrb[15].mxu0  ;;  %809 = vmatmul.mubr.f32.gmra.mrb[6].mxu1 %v325_v17 }
  0xf4   :  { %811 = vmatprep.mubr.msk.f32.mxu1 %vm909_vm1, %v908_v0 }
  0xf5   :  { %v326_v21 = vmax.f32 %v231_v19, 0.0 }
  0xf6   :  { %v235_v22 = vpop.f32.mrb[16].mxu0 }
  0xf7   :  { %v236_v23 = vadd.f32 %v1166_v52, %v235_v22  ;;  %v709_v24 = vpop.f32.mrb[17].mxu0  ;;  %812 = vmatmul.mubr.f32.gmra.mrb[8].mxu1 %v326_v21 }
  0xf8   :  { %814 = vmatprep.mubr.msk.f32.mxu1 %vm909_vm1, %v908_v0 }
  0xf9   :  { %v327_v25 = vmax.f32 %v236_v23, 0.0 }
  0xfa   :  { %v240_v26 = vpop.f32.mrb[18].mxu0 }
  0xfb   :  { %v241_v27 = vadd.f32 %v1166_v52, %v240_v26  ;;  %v712_v28 = vpop.f32.mrb[19].mxu0  ;;  %815 = vmatmul.mubr.f32.gmra.mrb[10].mxu1 %v327_v25 }
  0xfc   :  { %817 = vmatprep.mubr.msk.f32.mxu1 %vm909_vm1, %v908_v0  ;;  %v1242_v28 = vld [vmem:[%s1373_s4] ss:$0 sm:$0xff] }
  0xfd   :  { %v328_v29 = vmax.f32 %v241_v27, 0.0 }
  0xfe   :  { %v245_v30 = vpop.f32.mrb[20].mxu0 }
  0xff   :  { %v246_v31 = vadd.f32 %v1166_v52, %v245_v30  ;;  %v715_v32 = vpop.f32.mrb[21].mxu0  ;;  %818 = vmatmul.mubr.f32.gmra.mrb[12].mxu1 %v328_v29 }
 0x100   :  { %820 = vmatprep.mubr.msk.f32.mxu1 %vm909_vm1, %v908_v0 }
 0x101   :  { %v329_v33 = vmax.f32 %v246_v31, 0.0 }
 0x102   :  { %v250_v34 = vpop.f32.mrb[22].mxu0 }
 0x103   :  { %v251_v35 = vadd.f32 %v1166_v52, %v250_v34  ;;  %v718_v36 = vpop.f32.mrb[23].mxu0  ;;  %821 = vmatmul.mubr.f32.gmra.mrb[14].mxu1 %v329_v33 }
 0x104   :  { %823 = vmatprep.mubr.msk.f32.mxu1 %vm909_vm1, %v908_v0 }
 0x105   :  { %v330_v37 = vmax.f32 %v251_v35, 0.0 }
 0x106   :  { %v255_v38 = vpop.f32.mrb[24].mxu0 }
 0x107   :  { %v256_v39 = vadd.f32 %v1166_v52, %v255_v38  ;;  %v721_v40 = vpop.f32.mrb[25].mxu0  ;;  %824 = vmatmul.mubr.f32.gmra.mrb[16].mxu1 %v330_v37 }
 0x108   :  { %826 = vmatprep.mubr.msk.f32.mxu1 %vm909_vm1, %v908_v0 }
 0x109   :  { %v331_v41 = vmax.f32 %v256_v39, 0.0 }
 0x10a   :  { %v260_v42 = vpop.f32.mrb[26].mxu0 }
 0x10b   :  { %v261_v43 = vadd.f32 %v1166_v52, %v260_v42  ;;  %v724_v44 = vpop.f32.mrb[27].mxu0  ;;  %827 = vmatmul.mubr.f32.gmra.mrb[18].mxu1 %v331_v41 }
 0x10c   :  { %829 = vmatprep.mubr.msk.f32.mxu1 %vm909_vm1, %v908_v0 }
 0x10d   :  { %v332_v45 = vmax.f32 %v261_v43, 0.0 }
 0x10e   :  { %v265_v46 = vpop.f32.mrb[28].mxu0 }
 0x10f   :  { %v266_v47 = vadd.f32 %v1166_v52, %v265_v46  ;;  %v727_v48 = vpop.f32.mrb[29].mxu0  ;;  %830 = vmatmul.mubr.f32.gmra.mrb[20].mxu1 %v332_v45 }
 0x110   :  { %832 = vmatprep.mubr.msk.f32.mxu1 %vm909_vm1, %v908_v0 }
 0x111   :  { %v333_v49 = vmax.f32 %v266_v47, 0.0 }
 0x112   :  { %v270_v50 = vpop.f32.mrb[30].mxu0 }
 0x113   :  { %v271_v51 = vadd.f32 %v1166_v52, %v270_v50  ;;  %v730_v53 = vpop.f32.mrb[31].mxu0  ;;  %833 = vmatmul.mubr.f32.gmra.mrb[22].mxu1 %v333_v49 }
 0x114   :  { %835 = vmatprep.mubr.msk.f32.mxu1 %vm909_vm1, %v908_v0 }
 0x115   :  { %v334_v54 = vmax.f32 %v271_v51, 0.0 }
 0x116   :  { %v275_v55 = vpop.f32.mrb[32].mxu0 }
 0x117   :  { %v276_v56 = vadd.f32 %v1166_v52, %v275_v55  ;;  %v733_v57 = vpop.f32.mrb[33].mxu0  ;;  %836 = vmatmul.mubr.f32.gmra.mrb[24].mxu1 %v334_v54 }
 0x118   :  { %838 = vmatprep.mubr.msk.f32.mxu1 %vm909_vm1, %v908_v0 }
 0x119   :  { %v335_v58 = vmax.f32 %v276_v56, 0.0 }
 0x11a   :  { %v280_v59 = vpop.f32.mrb[34].mxu0 }
 0x11b   :  { %v281_v60 = vadd.f32 %v1166_v52, %v280_v59  ;;  %v736_v61 = vpop.f32.mrb[35].mxu0  ;;  %839 = vmatmul.mubr.f32.gmra.mrb[26].mxu1 %v335_v58 }
 0x11c   :  { %841 = vmatprep.mubr.msk.f32.mxu1 %vm909_vm1, %v908_v0 }
 0x11d   :  { %v336_v62 = vmax.f32 %v281_v60, 0.0 }
 0x11e   :  { %v285_v63 = vpop.f32.mrb[36].mxu0 }
 0x11f   :  { %v286_v1 = vadd.f32 %v1166_v52, %v285_v63  ;;  %v739_v2 = vpop.f32.mrb[37].mxu0  ;;  %842 = vmatmul.mubr.f32.gmra.mrb[28].mxu1 %v336_v62 }
 0x120   :  { %844 = vmatprep.mubr.msk.f32.mxu1 %vm909_vm1, %v908_v0 }
 0x121   :  { %v337_v3 = vmax.f32 %v286_v1, 0.0 }
 0x122   :  { %v290_v4 = vpop.f32.mrb[38].mxu0 }
 0x123   :  { %v291_v5 = vadd.f32 %v1166_v52, %v290_v4  ;;  %v742_v6 = vpop.f32.mrb[39].mxu0  ;;  %845 = vmatmul.mubr.f32.gmra.mrb[30].mxu1 %v337_v3 }
 0x124   :  { %847 = vmatprep.mubr.msk.f32.mxu1 %vm909_vm1, %v908_v0 }
 0x125   :  { %v338_v7 = vmax.f32 %v291_v5, 0.0 }
 0x126   :  { %v295_v8 = vpop.f32.mrb[40].mxu0 }
 0x127   :  { %v296_v9 = vadd.f32 %v1166_v52, %v295_v8  ;;  %v745_v10 = vpop.f32.mrb[41].mxu0  ;;  %848 = vmatmul.mubr.f32.gmra.mrb[32].mxu1 %v338_v7 }
 0x128   :  { %850 = vmatprep.mubr.msk.f32.mxu1 %vm909_vm1, %v908_v0 }
 0x129   :  { %v339_v11 = vmax.f32 %v296_v9, 0.0 }
 0x12a   :  { %v300_v12 = vpop.f32.mrb[42].mxu0 }
 0x12b   :  { %v301_v13 = vadd.f32 %v1166_v52, %v300_v12  ;;  %v748_v14 = vpop.f32.mrb[43].mxu0  ;;  %851 = vmatmul.mubr.f32.gmra.mrb[34].mxu1 %v339_v11 }
 0x12c   :  { %853 = vmatprep.mubr.msk.f32.mxu1 %vm909_vm1, %v908_v0 }
 0x12d   :  { %v340_v15 = vmax.f32 %v301_v13, 0.0 }
 0x12e   :  { %v305_v16 = vpop.f32.mrb[44].mxu0 }
 0x12f   :  { %v306_v17 = vadd.f32 %v1166_v52, %v305_v16  ;;  %v751_v18 = vpop.f32.mrb[45].mxu0  ;;  %854 = vmatmul.mubr.f32.gmra.mrb[36].mxu1 %v340_v15 }
 0x130   :  { %856 = vmatprep.mubr.msk.f32.mxu1 %vm909_vm1, %v908_v0 }
 0x131   :  { %v341_v19 = vmax.f32 %v306_v17, 0.0 }
 0x132   :  { %v310_v20 = vpop.f32.mrb[46].mxu0 }
 0x133   :  { %v311_v21 = vadd.f32 %v1166_v52, %v310_v20  ;;  %v754_v22 = vpop.f32.mrb[47].mxu0  ;;  %857 = vmatmul.mubr.f32.gmra.mrb[38].mxu1 %v341_v19 }
 0x134   :  { %859 = vmatprep.mubr.msk.f32.mxu1 %vm909_vm1, %v908_v0 }
 0x135   :  { %v342_v23 = vmax.f32 %v311_v21, 0.0 }
 0x136   :  { %v315_v24 = vpop.f32.mrb[48].mxu0 }
 0x137   :  { %v316_v25 = vadd.f32 %v1166_v52, %v315_v24  ;;  %v757_v26 = vpop.f32.mrb[49].mxu0  ;;  %860 = vmatmul.mubr.f32.gmra.mrb[40].mxu1 %v342_v23 }
 0x138   :  { %862 = vmatprep.mubr.msk.f32.mxu1 %vm909_vm1, %v908_v0 }
 0x139   :  { %v343_v27 = vmax.f32 %v316_v25, 0.0 }
 0x13b   :  { %863 = vmatmul.mubr.f32.gmra.mrb[42].mxu1 %v343_v27 }
 0x1ae   :  { %v433_v29 = vpop.f32.mrb[50].mxu0 }
 0x1af   :  { %v434_v30 = vadd.f32 %v1242_v28, %v433_v29  ;;  %v792_v31 = vpop.f32.mrb[51].mxu0 }
 0x1b1   :  { %558 = vst.msk [vmem:[%s1374_s5] sm:$0xff] %vm557_vm2, %v434_v30 }
 0x1b2   :  { %v438_v52 = vpop.f32.mrb[52].mxu0 }
 0x1b3   :  { %v439_v0 = vadd.f32 %v1242_v28, %v438_v52  ;;  %v795_v32 = vpop.f32.mrb[53].mxu0 }
 0x1b5   :  { %559 = vst.msk [vmem:[%s1374_s5 + $0x8] sm:$0xff] %vm557_vm2, %v439_v0 }
 0x1b6   :  { %v443_v33 = vpop.f32.mrb[54].mxu0 }
 0x1b7   :  { %v444_v34 = vadd.f32 %v1242_v28, %v443_v33  ;;  %v798_v35 = vpop.f32.mrb[55].mxu0 }
 0x1b9   :  { %560 = vst.msk [vmem:[%s1374_s5 + $0x10] sm:$0xff] %vm557_vm2, %v444_v34 }
 0x1ba   :  { %v448_v36 = vpop.f32.mrb[0].mxu1 }
 0x1bb   :  { %v449_v37 = vadd.f32 %v1242_v28, %v448_v36  ;;  %v801_v38 = vpop.f32.mrb[1].mxu1 }
 0x1bd   :  { %561 = vst.msk [vmem:[%s1374_s5 + $0x18] sm:$0xff] %vm557_vm2, %v449_v37 }
 0x1be   :  { %v453_v39 = vpop.f32.mrb[2].mxu1 }
 0x1bf   :  { %v454_v40 = vadd.f32 %v1242_v28, %v453_v39  ;;  %v804_v41 = vpop.f32.mrb[3].mxu1 }
 0x1c1   :  { %562 = vst.msk [vmem:[%s1374_s5 + $0x20] sm:$0xff] %vm557_vm2, %v454_v40 }
 0x1c2   :  { %v458_v42 = vpop.f32.mrb[4].mxu1 }
 0x1c3   :  { %v459_v43 = vadd.f32 %v1242_v28, %v458_v42  ;;  %v807_v44 = vpop.f32.mrb[5].mxu1 }
 0x1c5   :  { %563 = vst.msk [vmem:[%s1374_s5 + $0x28] sm:$0xff] %vm557_vm2, %v459_v43 }
 0x1c6   :  { %v463_v45 = vpop.f32.mrb[6].mxu1 }
 0x1c7   :  { %v464_v46 = vadd.f32 %v1242_v28, %v463_v45  ;;  %v810_v47 = vpop.f32.mrb[7].mxu1 }
 0x1c9   :  { %564 = vst.msk [vmem:[%s1374_s5 + $0x30] sm:$0xff] %vm557_vm2, %v464_v46 }
 0x1ca   :  { %v468_v48 = vpop.f32.mrb[8].mxu1 }
 0x1cb   :  { %v469_v49 = vadd.f32 %v1242_v28, %v468_v48  ;;  %v813_v50 = vpop.f32.mrb[9].mxu1 }
 0x1cd   :  { %565 = vst.msk [vmem:[%s1374_s5 + $0x38] sm:$0xff] %vm557_vm2, %v469_v49 }
 0x1ce   :  { %v473_v51 = vpop.f32.mrb[10].mxu1 }
 0x1cf   :  { %v474_v53 = vadd.f32 %v1242_v28, %v473_v51  ;;  %v816_v54 = vpop.f32.mrb[11].mxu1 }
 0x1d1   :  { %566 = vst.msk [vmem:[%s1374_s5 + $0x40] sm:$0xff] %vm557_vm2, %v474_v53 }
 0x1d2   :  { %v478_v55 = vpop.f32.mrb[12].mxu1 }
 0x1d3   :  { %v479_v56 = vadd.f32 %v1242_v28, %v478_v55  ;;  %v819_v57 = vpop.f32.mrb[13].mxu1 }
 0x1d5   :  { %567 = vst.msk [vmem:[%s1374_s5 + $0x48] sm:$0xff] %vm557_vm2, %v479_v56 }
 0x1d6   :  { %v483_v58 = vpop.f32.mrb[14].mxu1 }
 0x1d7   :  { %v484_v59 = vadd.f32 %v1242_v28, %v483_v58  ;;  %v822_v60 = vpop.f32.mrb[15].mxu1 }
 0x1d9   :  { %568 = vst.msk [vmem:[%s1374_s5 + $0x50] sm:$0xff] %vm557_vm2, %v484_v59 }
 0x1da   :  { %v488_v61 = vpop.f32.mrb[16].mxu1 }
 0x1db   :  { %v489_v62 = vadd.f32 %v1242_v28, %v488_v61  ;;  %v825_v63 = vpop.f32.mrb[17].mxu1 }
 0x1dd   :  { %569 = vst.msk [vmem:[%s1374_s5 + $0x58] sm:$0xff] %vm557_vm2, %v489_v62 }
 0x1de   :  { %v493_v1 = vpop.f32.mrb[18].mxu1 }
 0x1df   :  { %v494_v2 = vadd.f32 %v1242_v28, %v493_v1  ;;  %v828_v3 = vpop.f32.mrb[19].mxu1 }
 0x1e1   :  { %570 = vst.msk [vmem:[%s1374_s5 + $0x60] sm:$0xff] %vm557_vm2, %v494_v2 }
 0x1e2   :  { %v498_v4 = vpop.f32.mrb[20].mxu1 }
 0x1e3   :  { %v499_v5 = vadd.f32 %v1242_v28, %v498_v4  ;;  %v831_v6 = vpop.f32.mrb[21].mxu1 }
 0x1e5   :  { %571 = vst.msk [vmem:[%s1374_s5 + $0x68] sm:$0xff] %vm557_vm2, %v499_v5 }
 0x1e6   :  { %v503_v7 = vpop.f32.mrb[22].mxu1 }
 0x1e7   :  { %v504_v8 = vadd.f32 %v1242_v28, %v503_v7  ;;  %v834_v9 = vpop.f32.mrb[23].mxu1 }
 0x1e9   :  { %572 = vst.msk [vmem:[%s1374_s5 + $0x70] sm:$0xff] %vm557_vm2, %v504_v8 }
 0x1ea   :  { %v508_v10 = vpop.f32.mrb[24].mxu1 }
 0x1eb   :  { %v509_v11 = vadd.f32 %v1242_v28, %v508_v10  ;;  %v837_v12 = vpop.f32.mrb[25].mxu1 }
 0x1ed   :  { %573 = vst.msk [vmem:[%s1374_s5 + $0x78] sm:$0xff] %vm557_vm2, %v509_v11 }
 0x1ee   :  { %v513_v13 = vpop.f32.mrb[26].mxu1 }
 0x1ef   :  { %v514_v14 = vadd.f32 %v1242_v28, %v513_v13  ;;  %v840_v15 = vpop.f32.mrb[27].mxu1 }
 0x1f1   :  { %574 = vst.msk [vmem:[%s1374_s5 + $0x80] sm:$0xff] %vm557_vm2, %v514_v14 }
 0x1f2   :  { %v518_v16 = vpop.f32.mrb[28].mxu1 }
 0x1f3   :  { %v519_v17 = vadd.f32 %v1242_v28, %v518_v16  ;;  %v843_v18 = vpop.f32.mrb[29].mxu1 }
 0x1f5   :  { %575 = vst.msk [vmem:[%s1374_s5 + $0x88] sm:$0xff] %vm557_vm2, %v519_v17 }
 0x1f6   :  { %v523_v19 = vpop.f32.mrb[30].mxu1 }
 0x1f7   :  { %v524_v20 = vadd.f32 %v1242_v28, %v523_v19  ;;  %v846_v21 = vpop.f32.mrb[31].mxu1 }
 0x1f9   :  { %576 = vst.msk [vmem:[%s1374_s5 + $0x90] sm:$0xff] %vm557_vm2, %v524_v20 }
 0x1fa   :  { %v528_v22 = vpop.f32.mrb[32].mxu1 }
 0x1fb   :  { %v529_v23 = vadd.f32 %v1242_v28, %v528_v22  ;;  %v849_v24 = vpop.f32.mrb[33].mxu1 }
 0x1fd   :  { %577 = vst.msk [vmem:[%s1374_s5 + $0x98] sm:$0xff] %vm557_vm2, %v529_v23 }
 0x1fe   :  { %v533_v25 = vpop.f32.mrb[34].mxu1 }
 0x1ff   :  { %v534_v26 = vadd.f32 %v1242_v28, %v533_v25  ;;  %v852_v27 = vpop.f32.mrb[35].mxu1 }
 0x201   :  { %578 = vst.msk [vmem:[%s1374_s5 + $0xa0] sm:$0xff] %vm557_vm2, %v534_v26 }
 0x202   :  { %v538_v29 = vpop.f32.mrb[36].mxu1 }
 0x203   :  { %v539_v30 = vadd.f32 %v1242_v28, %v538_v29  ;;  %v855_v31 = vpop.f32.mrb[37].mxu1 }
 0x205   :  { %579 = vst.msk [vmem:[%s1374_s5 + $0xa8] sm:$0xff] %vm557_vm2, %v539_v30 }
 0x206   :  { %v543_v52 = vpop.f32.mrb[38].mxu1 }
 0x207   :  { %v544_v0 = vadd.f32 %v1242_v28, %v543_v52  ;;  %v858_v32 = vpop.f32.mrb[39].mxu1 }
 0x209   :  { %580 = vst.msk [vmem:[%s1374_s5 + $0xb0] sm:$0xff] %vm557_vm2, %v544_v0 }
 0x20a   :  { %v548_v33 = vpop.f32.mrb[40].mxu1 }
 0x20b   :  { %v549_v34 = vadd.f32 %v1242_v28, %v548_v33  ;;  %v861_v35 = vpop.f32.mrb[41].mxu1 }
 0x20d   :  { %581 = vst.msk [vmem:[%s1374_s5 + $0xb8] sm:$0xff] %vm557_vm2, %v549_v34 }
 0x20e   :  { %v553_v36 = vpop.f32.mrb[42].mxu1 }
 0x20f   :  { %v554_v37 = vadd.f32 %v1242_v28, %v553_v36  ;;  %v864_v38 = vpop.f32.mrb[43].mxu1 }
 0x211   :  { %582 = vst.msk [vmem:[%s1374_s5 + $0xc0] sm:$0xff] %vm557_vm2, %v554_v37 }

</bundles_post_ra>
